<compile_context>
chip_gen: v7x
topology: tpu7x:2x2x1
jax: 0.10.0
libtpu: 0.0.40
codegen_flags: <defaults>
</compile_context>

<pallas_src>
import functools

import jax
import jax.numpy as jnp
from jax.experimental import pallas as pl
from jax.experimental.pallas import tpu as pltpu


def _round_up(x, m):
    return (x + m - 1) // m * m


def _vmem_capacity_bytes():
    """Physical VMEM of this generation; conservative fallback if unavailable."""
    try:
        return int(pltpu.get_tpu_info().vmem_capacity_bytes)
    except Exception:
        return 64 * 1024 * 1024  # v7x per-core size: safe lower bound everywhere


def _pick_t_tile(n, sub, requested=None):
    """Query-axis tile: n itself whenever n <= 256 (t grid collapses to 1)."""
    if requested is not None:
        if requested != n and (n % requested or requested % sub):
            raise ValueError(f"t_tile={requested} incompatible with n={n}")
        return requested
    if n <= 256:
        return n
    t = (256 // sub) * sub
    while t >= sub:
        if n % t == 0:
            return t
        t -= sub
    return n


def _aft_full_kernel(x_ref, wqkv_ref, bqkv_ref, wpos_ref, o_ref,
                     q_scr, ekkv_scr, *, d, n, n_p, b_blk, t_tile, t_grid):
    ti = pl.program_id(1)

    def project():
        # Fused QKV projection for the whole batch block: a single
        # (b_blk*n_p, d) x (d, 3d) MXU matmul with f32 accumulation.
        qkv = jnp.dot(x_ref[...], wqkv_ref[...],
                      preferred_element_type=jnp.float32) + bqkv_ref[...]
        q_scr[...] = qkv[:, :d]
        k = qkv[:, d:2 * d]
        v = qkv[:, 2 * d:]
        # Sequence rows >= n are padding; zero their contribution to num/den.
        valid = jax.lax.broadcasted_iota(jnp.int32, (n_p, 1), 0) < n
        for b in range(b_blk):                      # small static loop over batch
            kb = k[b * n_p:(b + 1) * n_p, :]
            vb = v[b * n_p:(b + 1) * n_p, :]
            # Per-column max of k cancels exactly in num/den (stability only).
            ek = jnp.exp(kb - jnp.max(kb, axis=0, keepdims=True))
            ek = jnp.where(valid, ek, 0.0)
            c0 = 2 * d * b
            ekkv_scr[:, c0:c0 + d] = (ek * vb).astype(ekkv_scr.dtype)
            ekkv_scr[:, c0 + d:c0 + 2 * d] = ek.astype(ekkv_scr.dtype)

    if t_grid == 1:
        project()                      # single t step: no branch at all
    else:
        pl.when(ti == 0)(project)      # once per batch block, reused by all t tiles

    # One (t_tile, n_p) x (n_p, b_blk*2d) MXU matmul yields numerator and
    # denominator for every sequence in the batch block at once.
    nd = jnp.dot(wpos_ref[...], ekkv_scr[...],
                 preferred_element_type=jnp.float32)

    t0 = 0 if t_grid == 1 else pl.multiple_of(ti * t_tile, t_tile)
    for b in range(b_blk):
        c0 = 2 * d * b
        num = nd[:, c0:c0 + d]
        den = nd[:, c0 + d:c0 + 2 * d]
        q_t = q_scr[pl.ds(b * n_p + t0, t_tile), :]
        # Exact division (cheap at (t_tile, d)) keeps parity with the PyTorch ratio.
        o_ref[b] = (jax.nn.sigmoid(q_t) * (num / den)).astype(o_ref.dtype)


def aft_full(x, wq, bq, wk, bk, wv, bv, pos_bias, *,
             compute_dtype=jnp.bfloat16, batch_block=None, t_tile=None):
    """x: (bs, n, d); wq/wk/wv: (d, d) PyTorch-style (out, in); b*: (d,); pos: (n, n).

    compute_dtype is the MXU-operand dtype (bf16 by default); accumulation and all
    exp / sigmoid / division math stay in f32.
    """
    bs, n, d = x.shape
    assert pos_bias.shape == (n, n)
    out_dtype = x.dtype
    cby = jnp.dtype(compute_dtype).itemsize
    oby = jnp.dtype(out_dtype).itemsize
    sub = 16 if (cby == 2 or oby == 2) else 8      # sublane packing multiple

    t_tile = _pick_t_tile(n, sub, t_tile)
    t_grid = n // t_tile
    n_p = _round_up(n, sub)                        # padded sequence rows in the slab

    # Generation-aware VMEM budget (128 MiB on v5e/v6e, 64 MiB on v7x) with headroom.
    vmem_cap = _vmem_capacity_bytes()
    budget = max(vmem_cap - (16 << 20), 16 << 20)

    def step_vmem(B):
        return (2 * B * n_p * d * cby              # x slab blocks (double-buffered)
                + 2 * B * t_tile * d * oby         # output blocks
                + 2 * (d * 3 * d * cby + 3 * d * 4)  # Wqkv + bias pipeline buffers
                + 2 * t_tile * n_p * cby           # exp(pos) tile
                + B * n_p * d * 4                  # q scratch (f32)
                + n_p * B * 2 * d * cby)           # [ek*v | ek] scratch

    if batch_block is None:
        B = min(bs, max(1, -(-256 // n_p)))        # aim for >=256 projection rows
        while B > 1 and step_vmem(B) > budget // 2:
            B -= 1
    else:
        B = max(1, min(int(batch_block), bs))
    bs_p = _round_up(bs, B)
    num_bb = bs_p // B

    vmem_limit = int(min(max(2 * step_vmem(B), 32 << 20), budget))

    # ---- wrapper-side (XLA) prep: pure layout / one-off precompute ----
    x_p = x
    if bs_p != bs or n_p != n:
        x_p = jnp.pad(x, ((0, bs_p - bs), (0, n_p - n), (0, 0)))
    x_slab = x_p.reshape(bs_p * n_p, d).astype(compute_dtype)

    wqkv_t = jnp.concatenate([wq.T, wk.T, wv.T], axis=1).astype(compute_dtype)  # (d,3d)
    bqkv = jnp.concatenate([bq, bk, bv]).reshape(1, 3 * d).astype(jnp.float32)

    # exp(pos) is batch-independent: compute once here (row-max stabilised; the
    # factor cancels in num/den). Padded key columns are zero -> contribute nothing.
    wpos = jnp.exp(pos_bias - jnp.max(pos_bias, axis=-1, keepdims=True))
    if n_p != n:
        wpos = jnp.pad(wpos, ((0, 0), (0, n_p - n)))
    wpos = wpos.astype(compute_dtype)

    kernel = functools.partial(_aft_full_kernel, d=d, n=n, n_p=n_p,
                               b_blk=B, t_tile=t_tile, t_grid=t_grid)

    flops = int(bs_p * (6 * n_p * d * d + 4 * n * n_p * d))
    transcendentals = int(bs_p * (2 * n_p * d + 2 * n * d))
    bytes_accessed = int(bs_p * n_p * d * cby + 3 * d * d * cby + 3 * d * 4
                         + n * n_p * cby + bs_p * n * d * oby)

    out = pl.pallas_call(
        kernel,
        out_shape=jax.ShapeDtypeStruct((bs_p, n, d), out_dtype),
        grid=(num_bb, t_grid),
        in_specs=[
            pl.BlockSpec((B * n_p, d), lambda bb, t: (bb, 0)),   # x slab (B sequences)
            pl.BlockSpec((d, 3 * d), lambda bb, t: (0, 0)),      # fused Wqkv^T
            pl.BlockSpec((1, 3 * d), lambda bb, t: (0, 0)),      # fused bias
            pl.BlockSpec((t_tile, n_p), lambda bb, t: (t, 0)),   # exp(pos) tile
        ],
        out_specs=pl.BlockSpec((B, t_tile, d), lambda bb, t: (bb, t, 0)),
        scratch_shapes=[
            pltpu.VMEM((B * n_p, d), jnp.float32),        # q for the batch block
            pltpu.VMEM((n_p, B * 2 * d), compute_dtype),  # [exp(k')*v | exp(k')]
        ],
        compiler_params=pltpu.CompilerParams(
            dimension_semantics=("parallel", "arbitrary"),
            vmem_limit_bytes=vmem_limit),
        cost_estimate=pl.CostEstimate(
            flops=flops,
            transcendentals=transcendentals,
            bytes_accessed=bytes_accessed),
    )(x_slab, wqkv_t, bqkv, wpos)

    return out[:bs] if bs_p != bs else out


def aft_full_reference(x, wq, bq, wk, bk, wv, bv, pos_bias):
    """Pure-JAX mirror of the PyTorch forward, for verification."""
    bs, n, d = x.shape
    q = x @ wq.T + bq
    k = (x @ wk.T + bk).reshape(1, bs, n, d)
    v = (x @ wv.T + bv).reshape(1, bs, n, d)
    pb = pos_bias.reshape(n, 1, n, 1)
    numerator = jnp.sum(jnp.exp(k + pb) * v, axis=2)          # (n, bs, d)
    denominator = jnp.sum(jnp.exp(k + pb), axis=2)            # (n, bs, d)
    out = numerator / denominator
    return jax.nn.sigmoid(q) * jnp.transpose(out, (1, 0, 2))


if __name__ == "__main__":
    # Module-default sequence length n=49 (exercises non-multiple-of-8 padding),
    # lane-dense d_model, bs=3 (exercises batch-block padding in the f32 run).
    bs, n, d_model = 3, 49, 128

    key = jax.random.PRNGKey(0)
    kx, kq, kk, kv, kp = jax.random.split(key, 5)

    # Linear weights ~ N(0, 0.001), biases = 0, mirroring the module's init_weights().
    x = jax.random.normal(kx, (bs, n, d_model), dtype=jnp.float32)
    wq = 0.001 * jax.random.normal(kq, (d_model, d_model), dtype=jnp.float32)
    wk = 0.001 * jax.random.normal(kk, (d_model, d_model), dtype=jnp.float32)
    wv = 0.001 * jax.random.normal(kv, (d_model, d_model), dtype=jnp.float32)
    bq = jnp.zeros((d_model,), dtype=jnp.float32)
    bk = jnp.zeros((d_model,), dtype=jnp.float32)
    bv = jnp.zeros((d_model,), dtype=jnp.float32)
    # position_biases start at ones in the module; perturb them so the exp(pos)
    # path is exercised with non-trivial (trained-like) values.
    pos_bias = 1.0 + 0.5 * jax.random.normal(kp, (n, n), dtype=jnp.float32)

    ref = aft_full_reference(x, wq, bq, wk, bk, wv, bv, pos_bias)

    # 1) f32 MXU operands, explicit batch_block=2 -> exercises batch padding and
    #    two grid steps; tight tolerance proves the semantics are preserved.
    out_f32 = jax.block_until_ready(
        aft_full(x, wq, bq, wk, bk, wv, bv, pos_bias,
                 compute_dtype=jnp.float32, batch_block=2))
    assert out_f32.shape == (bs, n, d_model)
    assert jnp.allclose(out_f32, ref, rtol=1e-3, atol=1e-6), "f32 mismatch vs reference"

    # 2) Default performance path: bf16 MXU operands (f32 accumulation and f32
    #    exp/sigmoid/division). Tolerance reflects bf16 operand quantization only.
    out_bf16 = jax.block_until_ready(
        aft_full(x, wq, bq, wk, bk, wv, bv, pos_bias))
    assert out_bf16.shape == (bs, n, d_model)
    assert jnp.allclose(out_bf16, ref, rtol=3e-2, atol=2e-4), "bf16 mismatch vs reference"

    print("KERNEL_OK")
</pallas_src>

<mosaic_0001>
module attributes {stable_mosaic.version = 11 : i64} {
  func.func @_aft_full_kernel(%arg0: i32, %arg1: i32, %arg2: memref<112x128xf32, #tpu.memory_space<vmem>>, %arg3: memref<128x384xf32, #tpu.memory_space<vmem>>, %arg4: memref<1x384xf32, #tpu.memory_space<vmem>>, %arg5: memref<49x56xf32, #tpu.memory_space<vmem>>, %arg6: memref<2x49x128xf32, #tpu.memory_space<vmem>>, %arg7: memref<112x128xf32, #tpu.memory_space<vmem>>, %arg8: memref<56x512xf32, #tpu.memory_space<vmem>>) attributes {dimension_semantics = [#tpu.dimension_semantics<parallel>, #tpu.dimension_semantics<arbitrary>], iteration_bounds = array<i64: 2, 1>, scalar_prefetch = 0 : i64, scratch_operands = 2 : i64, tpu.core_type = #tpu.core_type<tc>, window_params = [{transform_indices = @transform_0, window_bounds = array<i64: 112, 128>}, {pipeline_mode = #tpu.pipeline_mode<synchronous>, transform_indices = @transform_1, window_bounds = array<i64: 128, 384>}, {pipeline_mode = #tpu.pipeline_mode<synchronous>, transform_indices = @transform_2, window_bounds = array<i64: 1, 384>}, {transform_indices = @transform_3, window_bounds = array<i64: 49, 56>}, {transform_indices = @transform_4, window_bounds = array<i64: 2, 49, 128>}]} {
    %c0 = arith.constant 0 : index
    %c0_0 = arith.constant 0 : index
    %0 = vector.load %arg2[%c0, %c0_0] : memref<112x128xf32, #tpu.memory_space<vmem>>, vector<112x128xf32>
    %c0_1 = arith.constant 0 : index
    %c0_2 = arith.constant 0 : index
    %1 = vector.load %arg3[%c0_1, %c0_2] : memref<128x384xf32, #tpu.memory_space<vmem>>, vector<128x384xf32>
    %cst = arith.constant dense<0.000000e+00> : vector<112x384xf32>
    %2 = tpu.matmul %0, %1, %cst {dimension_numbers = #tpu.dot_dimension_numbers<[1], [0], [0], [1], [0, 0, 1, 1], [], []>} : vector<112x128xf32>, vector<128x384xf32>, vector<112x384xf32> -> vector<112x384xf32>
    %c0_3 = arith.constant 0 : index
    %c0_4 = arith.constant 0 : index
    %3 = vector.load %arg4[%c0_3, %c0_4] : memref<1x384xf32, #tpu.memory_space<vmem>>, vector<1x384xf32>
    %4 = vector.broadcast %3 : vector<1x384xf32> to vector<112x384xf32>
    %5 = arith.addf %2, %4 : vector<112x384xf32>
    %6 = vector.extract_strided_slice %5 {offsets = [0, 0], sizes = [112, 128], strides = [1, 1]} : vector<112x384xf32> to vector<112x128xf32>
    %c0_5 = arith.constant 0 : index
    %c0_6 = arith.constant 0 : index
    %7 = vector.load %arg7[%c0_5, %c0_6] : memref<112x128xf32, #tpu.memory_space<vmem>>, vector<112x128xf32>
    tpu.vector_store %arg7[%c0_5, %c0_6], %6 {strides = array<i32>} : memref<112x128xf32, #tpu.memory_space<vmem>>, vector<112x128xf32>,
    %8 = vector.extract_strided_slice %5 {offsets = [0, 128], sizes = [112, 128], strides = [1, 1]} : vector<112x384xf32> to vector<112x128xf32>
    %9 = vector.extract_strided_slice %5 {offsets = [0, 256], sizes = [112, 128], strides = [1, 1]} : vector<112x384xf32> to vector<112x128xf32>
    %10 = tpu.iota {dimensions = array<i32: 0>} : vector<56x1xi32>
    %c49_i32 = arith.constant 49 : i32
    %11 = vector.broadcast %c49_i32 : i32 to vector<56x1xi32>
    %12 = arith.cmpi slt, %10, %11 : vector<56x1xi32>
    %13 = vector.extract_strided_slice %8 {offsets = [0, 0], sizes = [56, 128], strides = [1, 1]} : vector<112x128xf32> to vector<56x128xf32>
    %14 = vector.extract_strided_slice %9 {offsets = [0, 0], sizes = [56, 128], strides = [1, 1]} : vector<112x128xf32> to vector<56x128xf32>
    %cst_7 = arith.constant dense<0xFF800000> : vector<128xf32>
    %15 = vector.multi_reduction <maximumf>, %13, %cst_7 [0] : vector<56x128xf32> to vector<128xf32>
    %16 = vector.shape_cast %15 : vector<128xf32> to vector<1x128xf32>
    %17 = vector.broadcast %16 : vector<1x128xf32> to vector<56x128xf32>
    %18 = arith.subf %13, %17 : vector<56x128xf32>
    %19 = math.exp %18 : vector<56x128xf32>
    %cst_8 = arith.constant 0.000000e+00 : f32
    %20 = vector.shape_cast %12 : vector<56x1xi1> to vector<56x1xi1>
    %21 = vector.broadcast %20 : vector<56x1xi1> to vector<56x128xi1>
    %22 = vector.broadcast %cst_8 : f32 to vector<56x128xf32>
    %23 = arith.select %21, %19, %22 : vector<56x128xi1>, vector<56x128xf32>
    %24 = arith.mulf %23, %14 : vector<56x128xf32>
    %c0_9 = arith.constant 0 : index
    %c0_10 = arith.constant 0 : index
    %25 = vector.load %arg8[%c0_9, %c0_10] : memref<56x512xf32, #tpu.memory_space<vmem>>, vector<56x128xf32>
    tpu.vector_store %arg8[%c0_9, %c0_10], %24 {strides = array<i32>} : memref<56x512xf32, #tpu.memory_space<vmem>>, vector<56x128xf32>,
    %c0_11 = arith.constant 0 : index
    %c128 = arith.constant 128 : index
    %26 = vector.load %arg8[%c0_11, %c128] : memref<56x512xf32, #tpu.memory_space<vmem>>, vector<56x128xf32>
    tpu.vector_store %arg8[%c0_11, %c128], %23 {strides = array<i32>} : memref<56x512xf32, #tpu.memory_space<vmem>>, vector<56x128xf32>,
    %27 = vector.extract_strided_slice %8 {offsets = [56, 0], sizes = [56, 128], strides = [1, 1]} : vector<112x128xf32> to vector<56x128xf32>
    %28 = vector.extract_strided_slice %9 {offsets = [56, 0], sizes = [56, 128], strides = [1, 1]} : vector<112x128xf32> to vector<56x128xf32>
    %cst_12 = arith.constant dense<0xFF800000> : vector<128xf32>
    %29 = vector.multi_reduction <maximumf>, %27, %cst_12 [0] : vector<56x128xf32> to vector<128xf32>
    %30 = vector.shape_cast %29 : vector<128xf32> to vector<1x128xf32>
    %31 = vector.broadcast %30 : vector<1x128xf32> to vector<56x128xf32>
    %32 = arith.subf %27, %31 : vector<56x128xf32>
    %33 = math.exp %32 : vector<56x128xf32>
    %cst_13 = arith.constant 0.000000e+00 : f32
    %34 = vector.shape_cast %12 : vector<56x1xi1> to vector<56x1xi1>
    %35 = vector.broadcast %34 : vector<56x1xi1> to vector<56x128xi1>
    %36 = vector.broadcast %cst_13 : f32 to vector<56x128xf32>
    %37 = arith.select %35, %33, %36 : vector<56x128xi1>, vector<56x128xf32>
    %38 = arith.mulf %37, %28 : vector<56x128xf32>
    %c0_14 = arith.constant 0 : index
    %c256 = arith.constant 256 : index
    %39 = vector.load %arg8[%c0_14, %c256] : memref<56x512xf32, #tpu.memory_space<vmem>>, vector<56x128xf32>
    tpu.vector_store %arg8[%c0_14, %c256], %38 {strides = array<i32>} : memref<56x512xf32, #tpu.memory_space<vmem>>, vector<56x128xf32>,
    %c0_15 = arith.constant 0 : index
    %c384 = arith.constant 384 : index
    %40 = vector.load %arg8[%c0_15, %c384] : memref<56x512xf32, #tpu.memory_space<vmem>>, vector<56x128xf32>
    tpu.vector_store %arg8[%c0_15, %c384], %37 {strides = array<i32>} : memref<56x512xf32, #tpu.memory_space<vmem>>, vector<56x128xf32>,
    %c0_16 = arith.constant 0 : index
    %c0_17 = arith.constant 0 : index
    %41 = vector.load %arg5[%c0_16, %c0_17] : memref<49x56xf32, #tpu.memory_space<vmem>>, vector<49x56xf32>
    %c0_18 = arith.constant 0 : index
    %c0_19 = arith.constant 0 : index
    %42 = vector.load %arg8[%c0_18, %c0_19] : memref<56x512xf32, #tpu.memory_space<vmem>>, vector<56x512xf32>
    %cst_20 = arith.constant dense<0.000000e+00> : vector<49x512xf32>
    %43 = tpu.matmul %41, %42, %cst_20 {dimension_numbers = #tpu.dot_dimension_numbers<[1], [0], [0], [1], [0, 0, 1, 1], [], []>} : vector<49x56xf32>, vector<56x512xf32>, vector<49x512xf32> -> vector<49x512xf32>
    %44 = vector.extract_strided_slice %43 {offsets = [0, 0], sizes = [49, 128], strides = [1, 1]} : vector<49x512xf32> to vector<49x128xf32>
    %45 = vector.extract_strided_slice %43 {offsets = [0, 128], sizes = [49, 128], strides = [1, 1]} : vector<49x512xf32> to vector<49x128xf32>
    %c0_21 = arith.constant 0 : index
    %c0_22 = arith.constant 0 : index
    %46 = vector.load %arg7[%c0_21, %c0_22] : memref<112x128xf32, #tpu.memory_space<vmem>>, vector<49x128xf32>
    %47 = arith.negf %46 : vector<49x128xf32>
    %48 = math.exp %47 : vector<49x128xf32>
    %cst_23 = arith.constant 1.000000e+00 : f32
    %49 = vector.broadcast %cst_23 : f32 to vector<49x128xf32>
    %50 = arith.addf %49, %48 : vector<49x128xf32>
    %51 = arith.divf %49, %50 : vector<49x128xf32>
    %52 = arith.divf %44, %45 : vector<49x128xf32>
    %53 = arith.mulf %51, %52 : vector<49x128xf32>
    %c0_24 = arith.constant 0 : index
    %c0_25 = arith.constant 0 : index
    %c0_26 = arith.constant 0 : index
    %54 = vector.load %arg6[%c0_24, %c0_25, %c0_26] : memref<2x49x128xf32, #tpu.memory_space<vmem>>, vector<1x49x128xf32>
    %55 = vector.shape_cast %54 : vector<1x49x128xf32> to vector<49x128xf32>
    %56 = vector.shape_cast %53 : vector<49x128xf32> to vector<1x49x128xf32>
    tpu.vector_store %arg6[%c0_24, %c0_25, %c0_26], %56 {strides = array<i32>} : memref<2x49x128xf32, #tpu.memory_space<vmem>>, vector<1x49x128xf32>,
    %57 = vector.extract_strided_slice %43 {offsets = [0, 256], sizes = [49, 128], strides = [1, 1]} : vector<49x512xf32> to vector<49x128xf32>
    %58 = vector.extract_strided_slice %43 {offsets = [0, 384], sizes = [49, 128], strides = [1, 1]} : vector<49x512xf32> to vector<49x128xf32>
    %c56 = arith.constant 56 : index
    %c0_27 = arith.constant 0 : index
    %59 = vector.load %arg7[%c56, %c0_27] : memref<112x128xf32, #tpu.memory_space<vmem>>, vector<49x128xf32>
    %60 = arith.negf %59 : vector<49x128xf32>
    %61 = math.exp %60 : vector<49x128xf32>
    %cst_28 = arith.constant 1.000000e+00 : f32
    %62 = vector.broadcast %cst_28 : f32 to vector<49x128xf32>
    %63 = arith.addf %62, %61 : vector<49x128xf32>
    %64 = arith.divf %62, %63 : vector<49x128xf32>
    %65 = arith.divf %57, %58 : vector<49x128xf32>
    %66 = arith.mulf %64, %65 : vector<49x128xf32>
    %c1 = arith.constant 1 : index
    %c0_29 = arith.constant 0 : index
    %c0_30 = arith.constant 0 : index
    %67 = vector.load %arg6[%c1, %c0_29, %c0_30] : memref<2x49x128xf32, #tpu.memory_space<vmem>>, vector<1x49x128xf32>
    %68 = vector.shape_cast %67 : vector<1x49x128xf32> to vector<49x128xf32>
    %69 = vector.shape_cast %66 : vector<49x128xf32> to vector<1x49x128xf32>
    tpu.vector_store %arg6[%c1, %c0_29, %c0_30], %69 {strides = array<i32>} : memref<2x49x128xf32, #tpu.memory_space<vmem>>, vector<1x49x128xf32>,
    return
  }
  func.func @transform_0(%arg0: i32, %arg1: i32) -> (i32, i32) {
    %c0_i32 = arith.constant 0 : i32
    %c0_i32_0 = arith.constant 0 : i32
    return %arg0, %c0_i32 : i32, i32
  }
  func.func @transform_1(%arg0: i32, %arg1: i32) -> (i32, i32) {
    %c0_i32 = arith.constant 0 : i32
    %c0_i32_0 = arith.constant 0 : i32
    %c0_i32_1 = arith.constant 0 : i32
    return %c0_i32, %c0_i32_0 : i32, i32
  }
  func.func @transform_2(%arg0: i32, %arg1: i32) -> (i32, i32) {
    %c0_i32 = arith.constant 0 : i32
    %c0_i32_0 = arith.constant 0 : i32
    %c0_i32_1 = arith.constant 0 : i32
    return %c0_i32, %c0_i32_0 : i32, i32
  }
  func.func @transform_3(%arg0: i32, %arg1: i32) -> (i32, i32) {
    %c0_i32 = arith.constant 0 : i32
    %c0_i32_0 = arith.constant 0 : i32
    return %arg1, %c0_i32 : i32, i32
  }
  func.func @transform_4(%arg0: i32, %arg1: i32) -> (i32, i32, i32) {
    %c0_i32 = arith.constant 0 : i32
    %c0_i32_0 = arith.constant 0 : i32
    return %arg0, %arg1, %c0_i32 : i32, i32, i32
  }
}

</mosaic_0001>

<bundles_post_ra>
// kernel: tpu_custom_call.1
= control target key start
LH: loop header
LB: loop body
LE: loop exit
PB: predicated region body
PF: predicated region fallthrough
CT: control target
= control target key end

     0   :  { %9 = vsyncpa [#allocation5], 0  ;;  %s2426_s0 = inlined_call_operand.hbm [shape: f32[224,128], index: 0, kind: input, shape index: {}]   ;;  %s2427_s1 = inlined_call_operand.hbm [shape: f32[128,384], index: 1, kind: input, shape index: {}]   ;;  %s2428_s2 = inlined_call_operand.vmem [shape: f32[1,384], index: 2, kind: input, shape index: {}]   ;;  %s2429_s3 = inlined_call_operand.hbm [shape: f32[49,56], index: 3, kind: input, shape index: {}]   ;;  %s2430_s4 = inlined_call_operand.vmem [shape: f32[4,49,128], index: 4, kind: output, shape index: {}]  }
   0x1   :  { %11 = vsyncpa [#allocation5 + $0x1], 0 }
   0x2   :  { %12 = vsyncpa [#allocation7], 0  ;;  %s1955_s15 = smov 0   ;;  %s1957_s16 = smov 0  }
   0x3   :  { %s1959_s17 = smov 0   ;;  %s1961_s18 = smov 0  }
   0x4   :  { %s1963_s19 = smov 0   ;;  %s1965_s20 = smov 0  }
   0x5 LB: > { %s1353_s21 = sadd.s32 4294967295, %s1920_s20   ;;  %p50_p0 = scmp.ne.s32.totalorder %s1904_s16, %s1900_s15  ;;  %s1920_s20 = sphi %s1965_s20, %s18_s20   ;;  %s1916_s19 = sphi %s1963_s19, %s2447_s19   ;;  %s1912_s18 = sphi %s1961_s18, %s2446_s18   ;;  %s1908_s17 = sphi %s1959_s17, %s2445_s17   ;;  %s1904_s16 = sphi %s1957_s16, %s2444_s16   ;;  %s1900_s15 = sphi %s1955_s15, %s2443_s15  }
   0x6   : > { %p1985_p1 = scmp.eq.s32.totalorder %s1353_s21, 0  ;;  %p1355_p2 = scmp.ge.s32.totalorder %s1920_s20, 1 }
   0x7   : > { %p157_p3 = scmp.lt.s32.totalorder %s1920_s20, 3  ;;  %s1922_s25 = smov [#allocation6]  }
   0x8   : > { %s2435_s22 = scalar_select %p1985_p1, 1, 0 }
   0x9   : > { %p1993_p4 = por %p1985_p1, %p50_p0  ;;  %p1997_p5 = pnand %p1355_p2, %p157_p3 }
   0xa   : > { %s169_s26 = sshll.u32 %s1922_s25, 4  ;;  %s1923_s28 = smov [#allocation8]   ;;  %s170_s26 = int_to_ptr.vmem [resolvable:$true] %s169_s26 }
   0xb   : > { %s2436_s23 = scalar_select %p1993_p4, 1, 0 }
   0xc   : > { %s2437_s24 = scalar_select %p1997_p5, 1, 0 }
   0xd   : > { %p1597_p6 = pneg %p1997_p5  ;;  %s188_s29 = sshll.u32 %s1923_s28, 4  ;;  %s2009_s29 = int_to_ptr.vmem [resolvable:$true] %s188_s29 }
   0xe   : > { %s1780_s6 = scalar_lea.hbm %s2427_s1, 6144 }
   0xf   : > { %p2005_p7 = pnand %p1597_p6, %p1985_p1  ;;  %p1781_p8 = scmp.ne.s32.totalorder %s2427_s1, %s1780_s6 }
  0x10   : > { %p1787_p12 = scmp.lt.u32.totalorder %s1780_s6, %s2427_s1 }
  0x11   : > { %p1782_p9 = pneg %p2005_p7 }
  0x13   : > { %p1783_p10 = pnand %p1782_p9, %p1781_p8 }
  0x15   : > { %p1784_p11 = pneg %p1783_p10 }
  0x17   : > { %p1789_p13 = pnand %p1787_p12, %p1784_p11 }
  0x19   : > { %1792 = shalt.err (!%p1789_p13)
}
  0x1a   : > { %s1793_s11 = scalar_lea.vmem %s170_s26, 6144  ;;  %p1801_p6 = scmp.lt.s32.totalorder %s170_s26, %s170_s26 }
  0x1b   : > { %p1794_p0 = scmp.ne.s32.totalorder %s170_s26, %s1793_s11  ;;  %p1802_p1 = scmp.lt.s32.totalorder %s1793_s11, %s1793_s11 }
  0x1d   : > { %p1796_p2 = pnand %p1794_p0, %p1782_p9  ;;  %p1803_p4 = por %p1802_p1, %p1801_p6 }
  0x1f   : > { %p1797_p3 = pneg %p1796_p2 }
  0x21   : > { %p1804_p5 = pnand %p1803_p4, %p1797_p3 }
  0x23   : > { %1807 = shalt.err (!%p1804_p5)
}
  0x24   : > { %s1924_s12 = smov 384   ;;  %s1925_s13 = smov 24  }
  0x25   : > { %1600 = dma.hbm_to_vmem [thread:$0]  (!%p2005_p7), %s2427_s1, 6144, %s170_s26, [#allocation7], %s1924_s12, %s1924_s12, %s1925_s13  }
  0x26   : > { %s1808_s28 = scalar_lea.hbm %s2429_s3, 896 }
  0x27   : > { %p1809_p8 = scmp.ne.s32.totalorder %s2429_s3, %s1808_s28  ;;  %p1815_p5 = scmp.lt.u32.totalorder %s1808_s28, %s2429_s3 }
  0x29   : > { %p1811_p1 = pnand %p1809_p8, %p1782_p9 }
  0x2b   : > { %p1812_p4 = pneg %p1811_p1 }
  0x2d   : > { %p1817_p10 = pnand %p1815_p5, %p1812_p4 }
  0x2f   : > { %1820 = shalt.err (!%p1817_p10)
}
  0x30   : > { %s1821_s26 = scalar_lea.vmem %s2009_s29, 896  ;;  %p1829_p0 = scmp.lt.s32.totalorder %s2009_s29, %s2009_s29 }
  0x31   : > { %p1822_p11 = scmp.ne.s32.totalorder %s2009_s29, %s1821_s26  ;;  %p1830_p2 = scmp.lt.s32.totalorder %s1821_s26, %s1821_s26 }
  0x33   : > { %p1824_p12 = pnand %p1822_p11, %p1782_p9  ;;  %p1831_p3 = por %p1830_p2, %p1829_p0 }
  0x35   : > { %p1825_p13 = pneg %p1824_p12 }
  0x37   : > { %p1832_p6 = pnand %p1831_p3, %p1825_p13 }
  0x39   : > { %1835 = shalt.err (!%p1832_p6)
}
  0x3a   : > { %s1926_s8 = smov 128   ;;  %s1927_s9 = smov 8  }
  0x3b   : > { %1603 = dma.hbm_to_vmem [thread:$0]  (!%p2005_p7), %s2429_s3, 896, %s2009_s29, [#allocation7], %s1926_s8, %s1926_s8, %s1927_s9  }
  0x3c   : > { %s30_s12 = sadd.s32 1, %s1916_s19  ;;  %s37_s13 = sadd.s32 1, %s1908_s17 }
  0x3d   : > { %p32_p9 = scmp.ge.s32.totalorder %s30_s12, 2  ;;  %p44_p8 = scmp.ne.s32.totalorder %s1908_s17, %s1904_s16 }
  0x3e   : > { %p45_p1 = scmp.eq.s32.totalorder %s1920_s20, 0  ;;  %p1610_p4 = scmp.lt.s32.totalorder %s1920_s20, 2 }
  0x3f   : > { %s2449_s12 = smov (%p32_p9, %s30_s12), 0  ;;  %s202_s14 = sand.u32 1, %s1908_s17  }
  0x40   : > { %p46_p5 = por %p45_p1, %p44_p8  ;;  %s34_s27 = ssub.s32 %s1916_s19, %s2449_s12 }
  0x41   : > { %p35_p10 = scmp.eq.s32.totalorder %s34_s27, 0  ;;  %s1584_s15 = smul.u32 112, %s202_s14 }
  0x42   : > { %s1402_s21 = smul.u32 1792, %s1916_s19  ;;  %p2073_p11 = pnand %p1610_p4, %p46_p5 }
  0x43   : > { %s2078_s29 = scalar_select %p35_p10, %s1908_s17, %s37_s13  }
  0x44   : > { %s2083_s5 = scalar_lea.hbm %s2426_s0, %s1402_s21  ;;  %s206_s6 = scalar_lea.vmem [#allocation4], %s1584_s15 }
  0x45   : > { %s213_s7 = sshll.u32 %s206_s6, 4  ;;  %s2087_s26 = scalar_lea.sflag [#allocation5], %s202_s14  ;;  %s2085_s7 = int_to_ptr.vmem [resolvable:$true] %s213_s7 }
  0x46   : > { %s1836_s10 = scalar_lea.hbm %s2083_s5, 1792  ;;  %p1838_p12 = pneg %p2073_p11 }
  0x47   : > { %p1837_p7 = scmp.ne.s32.totalorder %s2083_s5, %s1836_s10  ;;  %s1841_s27 = scalar_lea.hbm %s2426_s0, 3584 }
  0x48   : > { %p1842_p2 = scmp.lt.u32.totalorder %s2083_s5, %s2426_s0  ;;  %p1843_p3 = scmp.lt.u32.totalorder %s1841_s27, %s1836_s10 }
  0x49   : > { %p1839_p13 = pnand %p1838_p12, %p1837_p7  ;;  %p1845_p9 = scmp.lt.u32.totalorder %s1836_s10, %s2083_s5 }
  0x4a   : > { %p1844_p6 = por %p1843_p3, %p1842_p2 }
  0x4b   : > { %p1840_p0 = pneg %p1839_p13 }
  0x4c   : > { %p1846_p8 = por %p1845_p9, %p1844_p6 }
  0x4e   : > { %p1847_p1 = pnand %p1846_p8, %p1840_p0 }
  0x50   : > { %1850 = shalt.err (!%p1847_p1)
}
  0x51   : > { %s1851_s14 = scalar_lea.vmem %s2085_s7, 1792  ;;  %s1928_s15 = smov [#allocation4]  }
  0x52   : > { %p1852_p4 = scmp.ne.s32.totalorder %s2085_s7, %s1851_s14  ;;  %s1856_s30 = sshll.u32 %s1928_s15, 4  ;;  %s1857_s30 = int_to_ptr.vmem [resolvable:$false] %s1856_s30 }
  0x53   : > { %s1858_s6 = scalar_lea.vmem %s1857_s30, 3584  ;;  %p1859_p7 = scmp.lt.s32.totalorder %s2085_s7, %s1857_s30 }
  0x54   : > { %p1854_p5 = pnand %p1852_p4, %p1838_p12  ;;  %p1860_p13 = scmp.lt.s32.totalorder %s1858_s6, %s1851_s14 }
  0x56   : > { %p1855_p10 = pneg %p1854_p5  ;;  %p1861_p2 = por %p1860_p13, %p1859_p7 }
  0x58   : > { %p1862_p3 = pnand %p1861_p2, %p1855_p10 }
  0x5a   : > { %1865 = shalt.err (!%p1862_p3)
}
  0x5b   : > { %1607 = dma.hbm_to_vmem [thread:$0]  (!%p2073_p11), %s2083_s5, 1792, %s2085_s7, %s2087_s26, %s1926_s8, %s1926_s8, %s1927_s9  }
  0x5c   : > { %p2440_p12 = scmp.ne.s32.totalorder %s2437_s24, 0 }
  0x5d   : > { %s227_s10 = sand.u32 (!%p2440_p12), 1, %s1904_s16   ;;  %p2441_p0 = scmp.ne.s32.totalorder (!%p2440_p12), %s2436_s23, 0 }
  0x5e   : > { %225 = sbr.rel (%p2440_p12) target bundleno = 702 (0x2be), region = 36  ;;  %s228_s13 = scalar_lea.sflag (!%p2440_p12), [#allocation5], %s227_s10 }
  0x5f   : > { %s1585_s11 = smul.u32 (!%p2440_p12), 112, %s227_s10 }
  0x61   : > { %s2121_s27 = scalar_lea.vmem (!%p2440_p12), [#allocation4], %s1585_s11 }
  0x65   : > { %1891 = dma.done.wait (%p2441_p0), %s228_s13, 1792  }
  0x66   : > { %1893 = vsyncadd (%p2441_p0), %s228_s13, 4294965504  ;;  %p2442_p6 = scmp.ne.s32.totalorder %s2435_s22, 0 }
  0x68   : > { %1895 = dma.done.wait (%p2442_p6), [#allocation7], 7040  }
  0x69   : > { %1897 = vsyncadd (%p2442_p6), [#allocation7], 4294960256  ;;  %v1929_v0 = vmov 0.0   ;;  %v298_v1 = vld [vmem:[#allocation6 + $0x8] sm:$0xff]  ;;  %v301_v2 = vld [vmem:[#allocation6 + $0x20] sm:$0xff]  ;;  %vm846_vm1 = vcmask 457728  }
  0x6a   : > { %426 = vmatprep.mubr.f32.mxu0 %v1929_v0  ;;  %v297_v3 = vld [vmem:[#allocation6] sm:$0xff]  ;;  %v1488_v4 = vpack.c.bf16 %v301_v2, %v298_v1  ;;  %v300_v5 = vld [vmem:[#allocation6 + $0x18] sm:$0xff]  ;;  %v307_v7 = vld [vmem:[#allocation6 + $0x50] sm:$0xff]  ;;  %s1363_s24 = sshll.u32 %s1912_s18, 1 }
  0x6b   : > { %v304_v6 = vld [vmem:[#allocation6 + $0x38] sm:$0xff]  ;;  %v1490_v8 = vpack.c.bf16 %v300_v5, %v297_v3  ;;  %v303_v10 = vld [vmem:[#allocation6 + $0x30] sm:$0xff]  ;;  %v306_v11 = vld [vmem:[#allocation6 + $0x48] sm:$0xff]  ;;  %p273_p11 = scmp.lt.s32.totalorder %s1363_s24, 3 }
  0x6c   : > { %v1492_v9 = vpack.c.bf16 %v307_v7, %v304_v6  ;;  %v310_v12 = vld [vmem:[#allocation6 + $0x68] sm:$0xff]  ;;  %1489 = vmatprep.subr.bf16.mxu0 %v1488_v4  ;;  %v313_v13 = vld [vmem:[#allocation6 + $0x80] sm:$0xff]  ;;  %v1494_v14 = vpack.c.bf16 %v306_v11, %v303_v10  ;;  %v312_v17 = vld [vmem:[#allocation6 + $0x78] sm:$0xff] }
  0x6d   : > { %1491 = vmatpush1.bf16.msra.mxu0 %v1490_v8  ;;  %v1496_v15 = vpack.c.bf16 %v313_v13, %v310_v12  ;;  %v309_v16 = vld [vmem:[#allocation6 + $0x60] sm:$0xff]  ;;  %v316_v18 = vld [vmem:[#allocation6 + $0x98] sm:$0xff]  ;;  %v319_v19 = vld [vmem:[#allocation6 + $0xb0] sm:$0xff]  ;;  %s2451_s24 = smov (!%p273_p11, %s1363_s24), 3 }
  0x6e   : > { %1493 = vmatprep.subr.bf16.mxu0 %v1492_v9  ;;  %v1498_v20 = vpack.c.bf16 %v312_v17, %v309_v16  ;;  %v1500_v21 = vpack.c.bf16 %v319_v19, %v316_v18  ;;  %v315_v22 = vld [vmem:[#allocation6 + $0x90] sm:$0xff]  ;;  %v318_v23 = vld [vmem:[#allocation6 + $0xa8] sm:$0xff]  ;;  %v325_v25 = vld [vmem:[#allocation6 + $0xe0] sm:$0xff]  ;;  %s1586_s18 = smul.u32 56, %s2451_s24 }
  0x6f   : > { %v322_v24 = vld [vmem:[#allocation6 + $0xc8] sm:$0xff]  ;;  %v2133_v26 = vld [vmem:[%s2121_s27] sm:$0xff]  ;;  %v1502_v28 = vpack.c.bf16 %v318_v23, %v315_v22  ;;  %v324_v29 = vld [vmem:[#allocation6 + $0xd8] sm:$0xff] }
  0x70   : > { %v321_v27 = vld [vmem:[#allocation6 + $0xc0] sm:$0xff]  ;;  %1467 = vmatprep.mubr.f32.mxu1 %v2133_v26  ;;  %v299_v30 = vld [vmem:[#allocation6 + $0x10] sm:$0xff]  ;;  %v302_v31 = vld [vmem:[#allocation6 + $0x28] sm:$0xff]  ;;  %v1504_v32 = vpack.c.bf16 %v325_v25, %v322_v24  ;;  %v347_v24 = vlaneseq  ;;  %s2388_s25 = scalar_lea.vmem %s2430_s4, %s1586_s18 }
  0x71   : > { %1495 = vmatpush1.bf16.msra.mxu0 %v1494_v14  ;;  %v328_v33 = vld [vmem:[#allocation6 + $0xf8] sm:$0xff]  ;;  %v1520_v34 = vpack.c.bf16 %v302_v31, %v299_v30  ;;  %v305_v35 = vld [vmem:[#allocation6 + $0x40] sm:$0xff]  ;;  %v331_v37 = vld [vmem:[#allocation6 + $0x110] sm:$0xff]  ;;  %v1506_v41 = vpack.c.bf16 %v324_v29, %v321_v27 }
  0x72   : > { %1497 = vmatprep.subr.bf16.mxu0 %v1496_v15  ;;  %v308_v36 = vld [vmem:[#allocation6 + $0x58] sm:$0xff]  ;;  %v311_v39 = vld [vmem:[#allocation6 + $0x70] sm:$0xff]  ;;  %v314_v40 = vld [vmem:[#allocation6 + $0x88] sm:$0xff]  ;;  %v1508_v42 = vpack.c.bf16 %v331_v37, %v328_v33  ;;  %v2165_v25 = vshrl.u32 %v347_v24, 7 }
  0x73   : > { %v1524_v38 = vpack.c.bf16 %v308_v36, %v305_v35  ;;  %1521 = vmatprep.subr.bf16.mxu1 %v1520_v34  ;;  %v327_v43 = vld [vmem:[#allocation6 + $0xf0] sm:$0xff]  ;;  %v330_v44 = vld [vmem:[#allocation6 + $0x108] sm:$0xff]  ;;  %v1528_v46 = vpack.c.bf16 %v314_v40, %v311_v39  ;;  %v337_v47 = vld [vmem:[#allocation6 + $0x140] sm:$0xff] }
  0x74   : > { %1523 = vmatpush3.bf16.msra.mxu1 %v1520_v34  ;;  %v334_v45 = vld [vmem:[#allocation6 + $0x128] sm:$0xff]  ;;  %v317_v48 = vld [vmem:[#allocation6 + $0xa0] sm:$0xff]  ;;  %v320_v49 = vld [vmem:[#allocation6 + $0xb8] sm:$0xff]  ;;  %v1510_v50 = vpack.c.bf16 %v330_v44, %v327_v43 }
  0x75   : > { %1499 = vmatpush1.bf16.msra.mxu0 %v1498_v20  ;;  %1525 = vmatprep.subr.bf16.mxu1 %v1524_v38  ;;  %v1512_v51 = vpack.c.bf16 %v337_v47, %v334_v45  ;;  %v333_v52 = vld [vmem:[#allocation6 + $0x120] sm:$0xff]  ;;  %v336_v53 = vld [vmem:[#allocation6 + $0x138] sm:$0xff]  ;;  %v1532_v55 = vpack.c.bf16 %v320_v49, %v317_v48  ;;  %v343_v56 = vld [vmem:[#allocation6 + $0x170] sm:$0xff] }
  0x76   : > { %1501 = vmatprep.subr.bf16.mxu0 %v1500_v21  ;;  %v340_v54 = vld [vmem:[#allocation6 + $0x158] sm:$0xff]  ;;  %v323_v57 = vld [vmem:[#allocation6 + $0xd0] sm:$0xff]  ;;  %v326_v58 = vld [vmem:[#allocation6 + $0xe8] sm:$0xff]  ;;  %v1514_v59 = vpack.c.bf16 %v336_v53, %v333_v52 }
  0x77   : > { %v1516_v60 = vpack.c.bf16 %v343_v56, %v340_v54  ;;  %v339_v61 = vld [vmem:[#allocation6 + $0x150] sm:$0xff]  ;;  %v342_v62 = vld [vmem:[#allocation6 + $0x168] sm:$0xff]  ;;  %v1536_v63 = vpack.c.bf16 %v326_v58, %v323_v57  ;;  %v329_v1 = vld [vmem:[#allocation6 + $0x100] sm:$0xff] }
  0x78   : > { %1527 = vmatpush3.bf16.msra.mxu1 %v1524_v38  ;;  %v332_v2 = vld [vmem:[#allocation6 + $0x118] sm:$0xff]  ;;  %v1518_v3 = vpack.c.bf16 %v342_v62, %v339_v61  ;;  %v335_v5 = vld [vmem:[#allocation6 + $0x130] sm:$0xff]  ;;  %v338_v6 = vld [vmem:[#allocation6 + $0x148] sm:$0xff]  ;;  %v353_v38 = vsub.s32 1, %v2165_v25 }
  0x79   : > { %1503 = vmatpush1.bf16.msra.mxu0 %v1502_v28  ;;  %1529 = vmatprep.subr.bf16.mxu1 %v1528_v46  ;;  %v1540_v4 = vpack.c.bf16 %v332_v2, %v329_v1  ;;  %v1544_v7 = vpack.c.bf16 %v338_v6, %v335_v5  ;;  %v341_v8 = vld [vmem:[#allocation6 + $0x160] sm:$0xff]  ;;  %v344_v9 = vld [vmem:[#allocation6 + $0x178] sm:$0xff]  ;;  %v2171_v27 = vld [vmem:[%s2428_s2] sm:$0x7] }
  0x7a   : > { %1505 = vmatprep.subr.bf16.mxu0 %v1504_v32  ;;  %v284_v10 = vld [vmem:[%s2121_s27 + $0x8] sm:$0xff]  ;;  %v1548_v11 = vpack.c.bf16 %v344_v9, %v341_v8  ;;  %v285_v12 = vld [vmem:[%s2121_s27 + $0x10] sm:$0xff]  ;;  %v286_v13 = vld [vmem:[%s2121_s27 + $0x18] sm:$0xff]  ;;  %v2194_v44 = vrot.slane %v2171_v27, %v353_v38 }
  0x7b   : > { %v287_v14 = vld [vmem:[%s2121_s27 + $0x20] sm:$0xff]  ;;  %v288_v15 = vld [vmem:[%s2121_s27 + $0x28] sm:$0xff]  ;;  %v289_v16 = vld [vmem:[%s2121_s27 + $0x30] sm:$0xff] }
  0x7c   : > { %1531 = vmatpush3.bf16.msra.mxu1 %v1528_v46  ;;  %v290_v17 = vld [vmem:[%s2121_s27 + $0x38] sm:$0xff]  ;;  %v291_v18 = vld [vmem:[%s2121_s27 + $0x40] sm:$0xff]  ;;  %v292_v19 = vld [vmem:[%s2121_s27 + $0x48] sm:$0xff] }
  0x7d   : > { %1507 = vmatpush1.bf16.msra.mxu0 %v1506_v41  ;;  %1533 = vmatprep.subr.bf16.mxu1 %v1532_v55  ;;  %v293_v20 = vld [vmem:[%s2121_s27 + $0x50] sm:$0xff]  ;;  %v294_v21 = vld [vmem:[%s2121_s27 + $0x58] sm:$0xff]  ;;  %v295_v22 = vld [vmem:[%s2121_s27 + $0x60] sm:$0xff] }
  0x7e   : > { %1509 = vmatprep.subr.bf16.mxu0 %v1508_v42  ;;  %v296_v23 = vld [vmem:[%s2121_s27 + $0x68] sm:$0xff] }
  0x80   : > { %1535 = vmatpush3.bf16.msra.mxu1 %v1532_v55 }
  0x81   : > { %1511 = vmatpush1.bf16.msra.mxu0 %v1510_v50  ;;  %1537 = vmatprep.subr.bf16.mxu1 %v1536_v63 }
  0x82   : > { %1513 = vmatprep.subr.bf16.mxu0 %v1512_v51 }
  0x84   : > { %1539 = vmatpush3.bf16.msra.mxu1 %v1536_v63 }
  0x85   : > { %1515 = vmatpush1.bf16.msra.mxu0 %v1514_v59  ;;  %1541 = vmatprep.subr.bf16.mxu1 %v1540_v4 }
  0x86   : > { %1517 = vmatprep.subr.bf16.mxu0 %v1516_v60 }
  0x88   : > { %1543 = vmatpush3.bf16.msra.mxu1 %v1540_v4 }
  0x89   : > { %1519 = vmatpush1.bf16.msra.mxu0 %v1518_v3  ;;  %1545 = vmatprep.subr.bf16.mxu1 %v1544_v7 }
  0x8c   : > { %427 = vmatmul.mubr.f32.vlgmr.msra.gmra.mrb[0].mxu0 %v2133_v26  ;;  %1547 = vmatpush3.bf16.msra.mxu1 %v1544_v7  ;;  %v349_v26 = vsub.s32 0, %v2165_v25 }
  0x8d   : > { %432 = vmatprep.mubr.f32.mxu0 %v1929_v0  ;;  %1549 = vmatprep.subr.bf16.mxu1 %v1548_v11 }
  0x8e   : > { %v2174_v28 = vrot.slane %v2171_v27, %v349_v26 }
  0x90   : > { %433 = vmatmul.mubr.f32.gmra.mrb[2].mxu0 %v284_v10  ;;  %1551 = vmatpush3.bf16.msra.mxu1 %v1548_v11 }
  0x91   : > { %438 = vmatprep.mubr.f32.mxu0 %v1929_v0 }
  0x93   : > { %1468 = vmatmul.mubr.f32.vlgmr.msra.gmra.mrb[0].mxu1 %v284_v10 }
  0x94   : > { %439 = vmatmul.mubr.f32.gmra.mrb[4].mxu0 %v285_v12  ;;  %1470 = vmatprep.mubr.f32.mxu1 %v285_v12 }
  0x95   : > { %444 = vmatprep.mubr.f32.mxu0 %v1929_v0 }
  0x97   : > { %1471 = vmatmul.mubr.f32.gmra.mrb[2].mxu1 %v286_v13 }
  0x98   : > { %445 = vmatmul.mubr.f32.gmra.mrb[6].mxu0 %v286_v13  ;;  %1473 = vmatprep.mubr.f32.mxu1 %v287_v14 }
  0x99   : > { %450 = vmatprep.mubr.f32.mxu0 %v1929_v0 }
  0x9b   : > { %1474 = vmatmul.mubr.f32.gmra.mrb[4].mxu1 %v288_v15 }
  0x9c   : > { %451 = vmatmul.mubr.f32.gmra.mrb[8].mxu0 %v287_v14  ;;  %1476 = vmatprep.mubr.f32.mxu1 %v289_v16 }
  0x9d   : > { %456 = vmatprep.mubr.f32.mxu0 %v1929_v0 }
  0x9f   : > { %1477 = vmatmul.mubr.f32.gmra.mrb[6].mxu1 %v290_v17 }
  0xa0   : > { %457 = vmatmul.mubr.f32.gmra.mrb[10].mxu0 %v288_v15  ;;  %1479 = vmatprep.mubr.f32.mxu1 %v291_v18 }
  0xa1   : > { %462 = vmatprep.mubr.f32.mxu0 %v1929_v0 }
  0xa3   : > { %1480 = vmatmul.mubr.f32.gmra.mrb[8].mxu1 %v292_v19 }
  0xa4   : > { %463 = vmatmul.mubr.f32.gmra.mrb[12].mxu0 %v289_v16  ;;  %1482 = vmatprep.mubr.f32.mxu1 %v293_v20 }
  0xa5   : > { %468 = vmatprep.mubr.f32.mxu0 %v1929_v0 }
  0xa7   : > { %1483 = vmatmul.mubr.f32.gmra.mrb[10].mxu1 %v294_v21 }
  0xa8   : > { %469 = vmatmul.mubr.f32.gmra.mrb[14].mxu0 %v290_v17  ;;  %1485 = vmatprep.mubr.f32.mxu1 %v295_v22 }
  0xa9   : > { %474 = vmatprep.mubr.f32.mxu0 %v1929_v0 }
  0xab   : > { %1486 = vmatmul.mubr.f32.gmra.mrb[12].mxu1 %v296_v23 }
  0xac   : > { %475 = vmatmul.mubr.f32.gmra.mrb[16].mxu0 %v291_v18  ;;  %932 = vmatprep.mubr.f32.mxu1 %v1929_v0 }
  0xad   : > { %480 = vmatprep.mubr.f32.mxu0 %v1929_v0 }
  0xb0   : > { %481 = vmatmul.mubr.f32.gmra.mrb[18].mxu0 %v292_v19 }
  0xb1   : > { %486 = vmatprep.mubr.f32.mxu0 %v1929_v0 }
  0xb4   : > { %487 = vmatmul.mubr.f32.gmra.mrb[20].mxu0 %v293_v20 }
  0xb5   : > { %492 = vmatprep.mubr.f32.mxu0 %v1929_v0 }
  0xb8   : > { %493 = vmatmul.mubr.f32.gmra.mrb[22].mxu0 %v294_v21 }
  0xb9   : > { %498 = vmatprep.mubr.f32.mxu0 %v1929_v0 }
  0xbc   : > { %499 = vmatmul.mubr.f32.gmra.mrb[24].mxu0 %v295_v22 }
  0xbd   : > { %504 = vmatprep.mubr.f32.mxu0 %v1929_v0 }
  0xc0   : > { %505 = vmatmul.mubr.f32.gmra.mrb[26].mxu0 %v296_v23 }
  0xc1   : > { %1039 = vmatprep.mubr.f32.mxu0 %v1929_v0 }
 0x15f   : > { %v428_v29 = vpop.f32.mrb[0].mxu0 }
 0x160   : > { %v2177_v30 = vadd.f32 %v428_v29, %v2174_v28  ;;  %v430_v31 = vpop.f32.mrb[1].mxu0 }
 0x161   : > { %v2204_v50 = vadd.f32 %v430_v31, %v2194_v44 }
 0x163   : > { %v434_v32 = vpop.f32.mrb[2].mxu0 }
 0x164   : > { %v2180_v33 = vadd.f32 %v434_v32, %v2174_v28  ;;  %v436_v34 = vpop.f32.mrb[3].mxu0 }
 0x165   : > { %v437_v58 = vadd.f32 %v436_v34, %v2194_v44 }
 0x166   : > { %v2186_v40 = vpop.f32.mrb[0].mxu1 }
 0x167   : > { %v440_v35 = vpop.f32.mrb[4].mxu0  ;;  %v2191_v43 = vpop.f32.mrb[1].mxu1 }
 0x168   : > { %v2183_v36 = vadd.f32 %v440_v35, %v2174_v28  ;;  %v442_v37 = vpop.f32.mrb[5].mxu0 }
 0x169   : > { %v443_v3 = vadd.f32 %v442_v37, %v2194_v44 }
 0x16a   : > { %v2196_v46 = vpop.f32.mrb[2].mxu1 }
 0x16b   : > { %v446_v39 = vpop.f32.mrb[6].mxu0  ;;  %v2201_v49 = vpop.f32.mrb[3].mxu1 }
 0x16c   : > { %v2189_v41 = vadd.f32 %v446_v39, %v2174_v28  ;;  %v448_v42 = vpop.f32.mrb[7].mxu0 }
 0x16d   : > { %v449_v6 = vadd.f32 %v448_v42, %v2194_v44 }
 0x16e   : > { %v2211_v54 = vpop.f32.mrb[4].mxu1 }
 0x16f   : > { %v452_v45 = vpop.f32.mrb[8].mxu0  ;;  %v2216_v57 = vpop.f32.mrb[5].mxu1 }
 0x170   : > { %v2199_v47 = vadd.f32 %v452_v45, %v2174_v28  ;;  %v454_v48 = vpop.f32.mrb[9].mxu0 }
 0x171   : > { %v2207_v51 = vadd.f32 %v454_v48, %v2194_v44 }
 0x172   : > { %v2223_v62 = vpop.f32.mrb[6].mxu1 }
 0x173   : > { %v675_v52 = vmax.f32 %v2204_v50, %v2207_v51  ;;  %v458_v53 = vpop.f32.mrb[10].mxu0  ;;  %v2226_v2 = vpop.f32.mrb[7].mxu1 }
 0x174   : > { %v2214_v55 = vadd.f32 %v458_v53, %v2174_v28  ;;  %v460_v56 = vpop.f32.mrb[11].mxu0 }
 0x175   : > { %v2220_v59 = vadd.f32 %v460_v56, %v2194_v44 }
 0x176   : > { %v2231_v9 = vpop.f32.mrb[8].mxu1 }
 0x177   : > { %v676_v60 = vmax.f32 %v437_v58, %v2220_v59  ;;  %v464_v61 = vpop.f32.mrb[12].mxu0  ;;  %v2236_v12 = vpop.f32.mrb[9].mxu1 }
 0x178   : > { %v465_v63 = vadd.f32 %v464_v61, %v2174_v28  ;;  %v466_v1 = vpop.f32.mrb[13].mxu0 }
 0x179   : > { %v678_v4 = vmax.f32 %v675_v52, %v676_v60  ;;  %v467_v5 = vadd.f32 %v466_v1, %v2194_v44 }
 0x17a   : > { %652 = vst [vmem:[#allocation2 + $0x30] sm:$0xff] %v465_v63  ;;  %v2238_v16 = vpop.f32.mrb[10].mxu1 }
 0x17b   : > { %v677_v7 = vmax.f32 %v443_v3, %v467_v5  ;;  %v470_v8 = vpop.f32.mrb[14].mxu0  ;;  %v2243_v19 = vpop.f32.mrb[11].mxu1 }
 0x17c   : > { %v2234_v10 = vadd.f32 %v470_v8, %v2174_v28  ;;  %v472_v11 = vpop.f32.mrb[15].mxu0 }
 0x17d   : > { %v679_v13 = vmax.f32 %v677_v7, %v449_v6  ;;  %v2256_v45 = vadd.f32 %v472_v11, %v2194_v44 }
 0x17e   : > { %v2245_v23 = vpop.f32.mrb[12].mxu1 }
 0x17f   : > { %v680_v14 = vmax.f32 %v678_v4, %v679_v13  ;;  %v476_v15 = vpop.f32.mrb[16].mxu0  ;;  %v2250_v29 = vpop.f32.mrb[13].mxu1 }
 0x180   : > { %v2241_v17 = vadd.f32 %v476_v15, %v2174_v28  ;;  %v478_v18 = vpop.f32.mrb[17].mxu0 }
 0x181   : > { %v681_v20 = vrot.slane %v680_v14, 4 }
 0x183   : > { %v682_v21 = vmax.f32 %v680_v14, %v681_v20  ;;  %v482_v22 = vpop.f32.mrb[18].mxu0 }
 0x184   : > { %v2248_v24 = vadd.f32 %v482_v22, %v2174_v28  ;;  %v484_v26 = vpop.f32.mrb[19].mxu0 }
 0x185   : > { %v683_v31 = vrot.slane %v682_v21, 2 }
 0x187   : > { %v684_v32 = vmax.f32 %v682_v21, %v683_v31  ;;  %v488_v34 = vpop.f32.mrb[20].mxu0 }
 0x188   : > { %v2253_v35 = vadd.f32 %v488_v34, %v2174_v28  ;;  %v490_v37 = vpop.f32.mrb[21].mxu0 }
 0x189   : > { %v685_v38 = vrot.slane %v684_v32, 1 }
 0x18b   : > { %v686_v39 = vmax.f32 %v684_v32, %v685_v38  ;;  %v494_v42 = vpop.f32.mrb[22].mxu0 }
 0x18c   : > { %v2259_v48 = vadd.f32 %v494_v42, %v2174_v28  ;;  %v496_v52 = vpop.f32.mrb[23].mxu0 }
 0x18d   : > { %v693_v53 = vsub.f32 %v467_v5, %v686_v39  ;;  %v2262_v56 = vadd.f32 %v496_v52, %v2194_v44  ;;  %v688_v60 = vsub.f32 %v437_v58, %v686_v39  ;;  %v687_v61 = vsub.f32 %v2204_v50, %v686_v39 }
 0x18e   : > { %v690_v63 = vsub.f32 %v449_v6, %v686_v39  ;;  %v689_v1 = vsub.f32 %v443_v3, %v686_v39  ;;  %v692_v4 = vsub.f32 %v2220_v59, %v686_v39  ;;  %v691_v7 = vsub.f32 %v2207_v51, %v686_v39 }
 0x18f   : > { %v706_v8 = vmul.f32 1.442695, %v693_v53  ;;  %v750_v11 = vmax.f32 %v2256_v45, %v2262_v56  ;;  %v500_v13 = vpop.f32.mrb[24].mxu0  ;;  %v696_v14 = vmul.f32 1.442695, %v688_v60  ;;  %v357_v58 = vsub.s32 2, %v2165_v25 }
 0x190   : > { %v2270_v5 = vadd.f32 %v500_v13, %v2174_v28  ;;  %v502_v15 = vpop.f32.mrb[25].mxu0  ;;  %v694_v20 = vmul.f32 1.442695, %v687_v61  ;;  %v700_v50 = vmul.f32 1.442695, %v690_v63  ;;  %v2274_v3 = vadd.f32 %v478_v18, %v2194_v44 }
 0x191   : > { %1668 = vpow2.f32 %v706_v8  ;;  %v2277_v51 = vadd.f32 %v502_v15, %v2194_v44  ;;  %v698_v59 = vmul.f32 1.442695, %v689_v1  ;;  %v704_v6 = vmul.f32 1.442695, %v692_v4 }
 0x192   : > { %1670 = vpow2.f32 %v696_v14  ;;  %v702_v31 = vmul.f32 1.442695, %v691_v7  ;;  %v2283_v34 = vrot.slane %v2171_v27, %v357_v58  ;;  %v2286_v18 = vadd.s32 48, %v2165_v25 }
 0x193   : > { %v751_v21 = vmax.f32 %v2274_v3, %v2277_v51  ;;  %v506_v22 = vpop.f32.mrb[26].mxu0  ;;  %1672 = vpow2.f32 %v694_v20  ;;  %v485_v39 = vadd.f32 %v484_v26, %v2194_v44  ;;  %v2291_v53 = vadd.f32 %v490_v37, %v2194_v44 }
 0x194   : > { %v507_v32 = vadd.f32 %v506_v22, %v2174_v28  ;;  %v508_v38 = vpop.f32.mrb[27].mxu0  ;;  %1674 = vpow2.f32 %v700_v50  ;;  %v583_v27 = vadd.f32 %v2186_v40, %v2283_v34  ;;  %v608_v25 = vadd.f32 %v2226_v2, %v2283_v34 }
 0x195   : > { %v753_v42 = vmax.f32 %v750_v11, %v751_v21  ;;  %v509_v52 = vadd.f32 %v508_v38, %v2194_v44  ;;  %1676 = vpow2.f32 %v698_v59  ;;  %vm674_vm0 = vcmp.lt.s32.totalorder %v2286_v18, 49 }
 0x196   : > { %659 = vst [vmem:[#allocation2 + $0x68] sm:$0xff] %v507_v32  ;;  %1678 = vpow2.f32 %v704_v6  ;;  %v578_v26 = vadd.f32 %v2191_v43, %v2283_v34  ;;  %v593_v44 = vadd.f32 %v2196_v46, %v2283_v34  ;;  %v588_v1 = vadd.f32 %v2201_v49, %v2283_v34 }
 0x197   : > { %v752_v28 = vmax.f32 %v485_v39, %v509_v52  ;;  %1680 = vpow2.f32 %v702_v31  ;;  %v603_v8 = vadd.f32 %v2211_v54, %v2283_v34  ;;  %v598_v14 = vadd.f32 %v2216_v57, %v2283_v34 }
 0x198   : > { %v1379_v18 = vmul.f32 -1.442695, %v2177_v30  ;;  %v1384_v30 = vmul.f32 -1.442695, %v2214_v55 }
 0x199   : > { %v754_v60 = vmax.f32 %v752_v28, %v2291_v53 }
 0x19b   : > { %v1669_v61 = vpop.eup %1668  ;;  %v755_v63 = vmax.f32 %v753_v42, %v754_v60 }
 0x19c   : > { %v1671_v37 = vpop.eup %1670  ;;  %v728_v40 = vsel %vm674_vm0, %v1669_v61, 0.0 }
 0x19d   : > { %v1673_v4 = vpop.eup %1672  ;;  %v730_v7 = vmul.f32 %v1671_v37, %v583_v27  ;;  %v756_v2 = vrot.slane %v755_v63, 4  ;;  %v735_v11 = vmul.f32 %v728_v40, %v608_v25 }
 0x19e   : > { %v1675_v43 = vpop.eup %1674  ;;  %v729_v13 = vmul.f32 %v1673_v4, %v578_v26  ;;  %v1552_v46 = vpack.c.bf16 %v1671_v37, %v1673_v4 }
 0x19f   : > { %v1677_v15 = vpop.eup %1676  ;;  %v757_v58 = vmax.f32 %v755_v63, %v756_v2  ;;  %v732_v20 = vmul.f32 %v1675_v43, %v593_v44  ;;  %v2318_v2 = vld [vmem:[#allocation8] sm:$0xff] }
 0x1a0   : > { %v1679_v49 = vpop.eup %1678  ;;  %v1554_v50 = vpack.c.bf16 %v730_v7, %v729_v13  ;;  %v731_v59 = vmul.f32 %v1677_v15, %v588_v1  ;;  %1553 = vmatprep.subr.bf16.mxu1 %v1552_v46  ;;  %v1556_v6 = vpack.c.bf16 %v1675_v43, %v1677_v15  ;;  %v618_v43 = vadd.f32 %v2236_v12, %v2283_v34 }
 0x1a1   : > { %v1681_v21 = vpop.eup %1680  ;;  %v758_v22 = vrot.slane %v757_v58, 2  ;;  %v734_v31 = vmul.f32 %v1679_v49, %v603_v8 }
 0x1a2   : > { %v1558_v32 = vpack.c.bf16 %v732_v20, %v731_v59  ;;  %v733_v54 = vmul.f32 %v1681_v21, %v598_v14  ;;  %1555 = vmatpush1.bf16.msra.mxu1 %v1554_v50  ;;  %v1560_v38 = vpack.c.bf16 %v1679_v49, %v1681_v21  ;;  %v633_v14 = vadd.f32 %v2238_v16, %v2283_v34 }
 0x1a3   : > { %v759_v42 = vmax.f32 %v757_v58, %v758_v22  ;;  %1557 = vmatprep.subr.bf16.mxu1 %v1556_v6  ;;  %v638_v49 = vadd.f32 %v2250_v29, %v2283_v34 }
 0x1a4   : > { %v1562_v28 = vpack.c.bf16 %v734_v31, %v733_v54 }
 0x1a5   : > { %v760_v57 = vrot.slane %v759_v42, 1 }
 0x1a6   : > { %1559 = vmatpush1.bf16.msra.mxu1 %v1558_v32 }
 0x1a7   : > { %v761_v27 = vmax.f32 %v759_v42, %v760_v57  ;;  %1561 = vmatprep.subr.bf16.mxu1 %v1560_v38  ;;  %v817_v57 = vld [vmem:[#allocation8 + $0x30] sm:$0x1] }
 0x1a9   : > { %v768_v60 = vsub.f32 %v509_v52, %v761_v27  ;;  %v762_v25 = vsub.f32 %v2256_v45, %v761_v27  ;;  %v764_v26 = vsub.f32 %v485_v39, %v761_v27  ;;  %v763_v63 = vsub.f32 %v2274_v3, %v761_v27  ;;  %v2328_v52 = vld [vmem:[#allocation8 + $0x10] sm:$0xff] }
 0x1aa   : > { %1563 = vmatpush1.bf16.msra.mxu1 %v1562_v28  ;;  %v766_v44 = vsub.f32 %v2262_v56, %v761_v27  ;;  %v765_v37 = vsub.f32 %v2291_v53, %v761_v27  ;;  %v767_v1 = vsub.f32 %v2277_v51, %v761_v27  ;;  %v2323_v51 = vld [vmem:[#allocation8 + $0x8] sm:$0xff]  ;;  %v643_v53 = vadd.f32 %v2245_v23, %v2283_v34 }
 0x1ab   : > { %v781_v40 = vmul.f32 1.442695, %v768_v60  ;;  %v769_v4 = vmul.f32 1.442695, %v762_v25  ;;  %1403 = vmatprep.subr.msk.mxu1 %vm674_vm0, %v1669_v61  ;;  %v773_v7 = vmul.f32 1.442695, %v764_v26  ;;  %v623_v61 = vadd.f32 %v2231_v9, %v2283_v34 }
 0x1ac   : > { %v771_v45 = vmul.f32 1.442695, %v763_v63  ;;  %v777_v39 = vmul.f32 1.442695, %v766_v44  ;;  %v775_v3 = vmul.f32 1.442695, %v765_v37 }
 0x1ad   : > { %1682 = vpow2.f32 %v781_v40  ;;  %v779_v56 = vmul.f32 1.442695, %v767_v1  ;;  %v814_v9 = vld [vmem:[#allocation8 + $0x18] sm:$0xff]  ;;  %v1380_v27 = vmul.f32 -1.442695, %v2180_v33 }
 0x1ae   : > { %1684 = vpow2.f32 %v769_v4  ;;  %881 = vmatpush1.msra.mxu1 %v735_v11  ;;  %v613_v11 = vadd.f32 %v2223_v62, %v2283_v34  ;;  %v628_v62 = vadd.f32 %v2243_v19, %v2283_v34  ;;  %v815_v19 = vld [vmem:[#allocation8 + $0x20] sm:$0xff]  ;;  %v816_v34 = vld [vmem:[#allocation8 + $0x28] sm:$0xff]  ;;  %v1381_v60 = vmul.f32 -1.442695, %v2183_v36 }
 0x1af   : > { %1365 = vmatmul.mubr.msk.f32.vlgmr.msra.gmra.mrb[14].mxu1 %vm846_vm1, %v2318_v2  ;;  %1686 = vpow2.f32 %v773_v7  ;;  %v1382_v25 = vmul.f32 -1.442695, %v2189_v41  ;;  %v1383_v63 = vmul.f32 -1.442695, %v2199_v47  ;;  %v1088_v41 = vld [vmem:[#allocation2 + $0x30] sm:$0x1] }
 0x1b0   : > { %938 = vmatprep.mubr.f32.mxu1 %v1929_v0  ;;  %1688 = vpow2.f32 %v771_v45  ;;  %v1385_v45 = vmul.f32 -1.442695, %v1088_v41 }
 0x1b1   : > { %1690 = vpow2.f32 %v777_v39 }
 0x1b2   : > { %1692 = vpow2.f32 %v775_v3 }
 0x1b3   : > { %1366 = vmatmul.mubr.msk.f32.gmra.mrb[16].mxu1 %vm846_vm1, %v2323_v51  ;;  %1694 = vpow2.f32 %v779_v56 }
 0x1b4   : > { %944 = vmatprep.mubr.f32.mxu1 %v1929_v0  ;;  %1696 = vpow2.f32 %v1379_v18 }
 0x1b5   : > { %1698 = vpow2.f32 %v1380_v27 }
 0x1b6   : > { %1700 = vpow2.f32 %v1381_v60 }
 0x1b7   : > { %v1683_v8 = vpop.eup %1682  ;;  %1367 = vmatmul.mubr.msk.f32.gmra.mrb[18].mxu1 %vm846_vm1, %v2328_v52  ;;  %1702 = vpow2.f32 %v1382_v25 }
 0x1b8   : > { %v1685_v13 = vpop.eup %1684  ;;  %v789_v23 = vsel %vm674_vm0, %v1683_v8, 0.0  ;;  %950 = vmatprep.mubr.f32.mxu1 %v1929_v0  ;;  %1704 = vpow2.f32 %v1383_v63 }
 0x1b9   : > { %v1687_v46 = vpop.eup %1686  ;;  %v790_v15 = vmul.f32 %v1685_v13, %v613_v11  ;;  %v796_v58 = vmul.f32 %v789_v23, %v643_v53 }
 0x1ba   : > { %v1689_v12 = vpop.eup %1688  ;;  %v792_v20 = vmul.f32 %v1687_v46, %v623_v61 }
 0x1bb   : > { %v1691_v50 = vpop.eup %1690  ;;  %v791_v59 = vmul.f32 %v1689_v12, %v618_v43  ;;  %1368 = vmatmul.mubr.msk.f32.gmra.mrb[20].mxu1 %vm846_vm1, %v814_v9  ;;  %v1564_v16 = vpack.c.bf16 %v1689_v12, %v1685_v13  ;;  %v1165_v12 = vld [vmem:[#allocation2 + $0x68] sm:$0x1] }
 0x1bc   : > { %v1693_v6 = vpop.eup %1692  ;;  %v794_v21 = vmul.f32 %v1691_v50, %v633_v14  ;;  %956 = vmatprep.mubr.f32.mxu1 %v1929_v0 }
 0x1bd   : > { %v1695_v22 = vpop.eup %1694  ;;  %v1566_v31 = vpack.c.bf16 %v791_v59, %v790_v15  ;;  %v793_v32 = vmul.f32 %v1693_v6, %v628_v62  ;;  %1565 = vmatprep.subr.bf16.mxu0 %v1564_v16  ;;  %1576 = vmatprep.subr.bf16.mxu1 %v1564_v16  ;;  %v1568_v54 = vpack.c.bf16 %v1693_v6, %v1687_v46  ;;  %v1391_v46 = vmul.f32 -1.442695, %v2270_v5 }
 0x1be   : > { %v795_v38 = vmul.f32 %v1695_v22, %v638_v49  ;;  %v1572_v42 = vpack.c.bf16 %v1695_v22, %v1691_v50  ;;  %v1697_v26 = vpop.eup %1696  ;;  %v1388_v50 = vmul.f32 -1.442695, %v2248_v24  ;;  %v1392_v6 = vmul.f32 -1.442695, %v1165_v12 }
 0x1bf   : > { %v1570_v28 = vpack.c.bf16 %v793_v32, %v792_v20  ;;  %1567 = vmatpush1.bf16.msra.mxu0 %v1566_v31  ;;  %1580 = vmatpush1.bf16.msra.mxu1 %v1566_v31  ;;  %v1699_v37 = vpop.eup %1698  ;;  %v1389_v32 = vmul.f32 -1.442695, %v2253_v35 }
 0x1c0   : > { %v1574_v29 = vpack.c.bf16 %v795_v38, %v794_v21  ;;  %1369 = vmatmul.mubr.msk.f32.gmra.mrb[22].mxu1 %vm846_vm1, %v815_v19  ;;  %1569 = vmatprep.subr.bf16.mxu0 %v1568_v54  ;;  %v1701_v33 = vpop.eup %1700  ;;  %v1111_v40 = vadd.f32 1.0, %v1699_v37 }
 0x1c1   : > { %1577 = vmatprep.subr.bf16.mxu1 %v1568_v54  ;;  %962 = vmatprep.mubr.f32.mxu1 %v1929_v0  ;;  %v1112_v47 = vadd.f32 1.0, %v1701_v33  ;;  %v1703_v7 = vpop.eup %1702 }
 0x1c2   : > { %v1705_v55 = vpop.eup %1704  ;;  %v1113_v3 = vadd.f32 1.0, %v1703_v7 }
 0x1c3   : > { %1571 = vmatpush1.bf16.msra.mxu0 %v1570_v28  ;;  %1581 = vmatpush1.bf16.msra.mxu1 %v1570_v28  ;;  %v1114_v43 = vadd.f32 1.0, %v1705_v55 }
 0x1c4   : > { %1370 = vmatmul.mubr.msk.f32.gmra.mrb[24].mxu1 %vm846_vm1, %v816_v34  ;;  %1573 = vmatprep.subr.bf16.mxu0 %v1572_v42 }
 0x1c5   : > { %1578 = vmatprep.subr.bf16.mxu1 %v1572_v42  ;;  %968 = vmatprep.mubr.f32.mxu1 %v1929_v0 }
 0x1c7   : > { %1575 = vmatpush1.bf16.msra.mxu0 %v1574_v29  ;;  %1582 = vmatpush1.bf16.msra.mxu1 %v1574_v29 }
 0x1c8   : > { %1371 = vmatmul.mubr.msk.f32.gmra.mrb[26].mxu1 %vm846_vm1, %v817_v57  ;;  %1404 = vmatprep.subr.msk.mxu0 %vm674_vm0, %v1683_v8 }
 0x1c9   : > { %1579 = vmatprep.subr.msk.mxu1 %vm674_vm0, %v1683_v8  ;;  %1063 = vmatprep.mubr.f32.mxu1 %v1929_v0  ;;  %v1390_v8 = vmul.f32 -1.442695, %v2259_v48 }
 0x1cb   : > { %988 = vmatpush1.msra.mxu0 %v796_v58  ;;  %1583 = vmatpush1.msra.mxu1 %v796_v58 }
 0x1cc   : > { %1372 = vmatmul.mubr.msk.f32.vlgmr.msra.gmra.mrb[28].mxu0 %vm846_vm1, %v2318_v2  ;;  %1376 = vmatmul.mubr.msk.f32.vlgmr.msra.gmra.mrb[28].mxu1 %vm846_vm1, %v815_v19 }
 0x1cd   : > { %1045 = vmatprep.mubr.f32.mxu0 %v1929_v0  ;;  %1069 = vmatprep.mubr.f32.mxu1 %v1929_v0 }
 0x1d0   : > { %1373 = vmatmul.mubr.msk.f32.gmra.mrb[30].mxu0 %vm846_vm1, %v2323_v51  ;;  %1377 = vmatmul.mubr.msk.f32.gmra.mrb[30].mxu1 %vm846_vm1, %v816_v34 }
 0x1d1   : > { %1051 = vmatprep.mubr.f32.mxu0 %v1929_v0  ;;  %1075 = vmatprep.mubr.f32.mxu1 %v1929_v0 }
 0x1d4   : > { %1374 = vmatmul.mubr.msk.f32.gmra.mrb[32].mxu0 %vm846_vm1, %v2328_v52  ;;  %1378 = vmatmul.mubr.msk.f32.gmra.mrb[32].mxu1 %vm846_vm1, %v817_v57  ;;  %v1386_v52 = vmul.f32 -1.442695, %v2234_v10  ;;  %v1387_v10 = vmul.f32 -1.442695, %v2241_v17 }
 0x1d5   : > { %1057 = vmatprep.mubr.f32.mxu0 %v1929_v0  ;;  %v1110_v0 = vadd.f32 1.0, %v1697_v26 }
 0x1d8   : > { %1375 = vmatmul.mubr.msk.f32.gmra.mrb[34].mxu0 %vm846_vm1, %v814_v9 }
 0x282   : > { %v934_v44 = vpop.f32.mrb[14].mxu1 }
 0x283   : > { %v936_v1 = vpop.f32.mrb[15].mxu1 }
 0x284   : > { %1706 = vrcp.f32 %v936_v1 }
 0x285   : > { %1708 = vrcp.f32 %v1110_v0 }
 0x286   : > { %v940_v36 = vpop.f32.mrb[16].mxu1  ;;  %1710 = vpow2.f32 %v1384_v30 }
 0x287   : > { %v942_v4 = vpop.f32.mrb[17].mxu1 }
 0x288   : > { %1712 = vrcp.f32 %v942_v4 }
 0x289   : > { %1714 = vrcp.f32 %v1111_v40 }
 0x28a   : > { %v946_v2 = vpop.f32.mrb[18].mxu1 }
 0x28b   : > { %v948_v39 = vpop.f32.mrb[19].mxu1 }
 0x28c   : > { %1716 = vrcp.f32 %v948_v39 }
 0x28d   : > { %1718 = vrcp.f32 %v1112_v47 }
 0x28e   : > { %v1707_v56 = vpop.eup %1706  ;;  %v952_v51 = vpop.f32.mrb[20].mxu1  ;;  %1720 = vpow2.f32 %v1385_v45 }
 0x28f   : > { %v1132_v53 = vmul.f32 %v1707_v56, %v934_v44  ;;  %v954_v61 = vpop.f32.mrb[21].mxu1  ;;  %v1709_v11 = vpop.eup %1708 }
 0x290   : > { %1722 = vrcp.f32 %v954_v61  ;;  %v1711_v13 = vpop.eup %1710 }
 0x291   : > { %v1145_v14 = vmul.f32 %v1709_v11, %v1132_v53  ;;  %1724 = vrcp.f32 %v1113_v3  ;;  %v1115_v58 = vadd.f32 1.0, %v1711_v13 }
 0x292   : > { %v1713_v23 = vpop.eup %1712  ;;  %1726 = vpow2.f32 %v1386_v52 }
 0x293   : > { %1152 = vst [vmem:[%s2388_s25] sm:$0xff] %v1145_v14  ;;  %v1134_v9 = vmul.f32 %v1713_v23, %v940_v36  ;;  %v958_v48 = vpop.f32.mrb[22].mxu1  ;;  %1728 = vpow2.f32 %v1390_v8  ;;  %v1715_v15 = vpop.eup %1714 }
 0x294   : > { %v960_v62 = vpop.f32.mrb[23].mxu1  ;;  %1730 = vrcp.f32 %v1114_v43 }
 0x295   : > { %v1146_v20 = vmul.f32 %v1715_v15, %v1134_v9  ;;  %1732 = vrcp.f32 %v960_v62 }
 0x296   : > { %v1717_v49 = vpop.eup %1716  ;;  %1734 = vpow2.f32 %v1387_v10 }
 0x297   : > { %v1719_v17 = vpop.eup %1718  ;;  %1153 = vst [vmem:[%s2388_s25 + $0x8] sm:$0xff] %v1146_v20  ;;  %v1136_v59 = vmul.f32 %v1717_v49, %v946_v2  ;;  %v964_v16 = vpop.f32.mrb[24].mxu1  ;;  %1736 = vpow2.f32 %v1391_v46 }
 0x298   : > { %v1721_v21 = vpop.eup %1720  ;;  %v966_v5 = vpop.f32.mrb[25].mxu1  ;;  %1738 = vrcp.f32 %v1115_v58 }
 0x299   : > { %v1147_v22 = vmul.f32 %v1719_v17, %v1136_v59  ;;  %1740 = vrcp.f32 %v966_v5  ;;  %v1116_v38 = vadd.f32 1.0, %v1721_v21 }
 0x29a   : > { %v1723_v31 = vpop.eup %1722  ;;  %1742 = vpow2.f32 %v1388_v50 }
 0x29b   : > { %v1725_v19 = vpop.eup %1724  ;;  %1154 = vst [vmem:[%s2388_s25 + $0x10] sm:$0xff] %v1147_v22  ;;  %v1138_v24 = vmul.f32 %v1723_v31, %v952_v51  ;;  %v970_v54 = vpop.f32.mrb[26].mxu1  ;;  %1744 = vpow2.f32 %v1392_v6 }
 0x29c   : > { %v1727_v42 = vpop.eup %1726  ;;  %v972_v28 = vpop.f32.mrb[27].mxu1 }
 0x29d   : > { %v1729_v29 = vpop.eup %1728  ;;  %v1148_v34 = vmul.f32 %v1725_v19, %v1138_v24  ;;  %1746 = vrcp.f32 %v972_v28  ;;  %v1187_v25 = vadd.f32 1.0, %v1727_v42 }
 0x29e   : > { %v1731_v57 = vpop.eup %1730  ;;  %1748 = vpow2.f32 %v1389_v32  ;;  %v1191_v0 = vadd.f32 1.0, %v1729_v29 }
 0x29f   : > { %v1733_v18 = vpop.eup %1732  ;;  %1155 = vst [vmem:[%s2388_s25 + $0x18] sm:$0xff] %v1148_v34  ;;  %1750 = vrcp.f32 %v1116_v38  ;;  %v1041_v27 = vpop.f32.mrb[28].mxu0 }
 0x2a0   : > { %v1065_v60 = vpop.f32.mrb[28].mxu1  ;;  %v1735_v35 = vpop.eup %1734  ;;  %v1140_v26 = vmul.f32 %v1733_v18, %v958_v48 }
 0x2a1   : > { %v1043_v63 = vpop.f32.mrb[29].mxu0  ;;  %v1067_v44 = vpop.f32.mrb[29].mxu1  ;;  %v1188_v4 = vadd.f32 1.0, %v1735_v35 }
 0x2a2   : > { %v1737_v37 = vpop.eup %1736  ;;  %1752 = vrcp.f32 %v1043_v63  ;;  %v1149_v30 = vmul.f32 %v1731_v57, %v1140_v26 }
 0x2a3   : > { %v1739_v1 = vpop.eup %1738  ;;  %1754 = vrcp.f32 %v1067_v44  ;;  %v1047_v36 = vpop.f32.mrb[30].mxu0  ;;  %v1192_v45 = vadd.f32 1.0, %v1737_v37 }
 0x2a4   : > { %v1741_v33 = vpop.eup %1740  ;;  %1756 = vrcp.f32 %v1187_v25  ;;  %v1071_v40 = vpop.f32.mrb[30].mxu1  ;;  %1156 = vst [vmem:[%s2388_s25 + $0x20] sm:$0xff] %v1149_v30 }
 0x2a5   : > { %v1743_v41 = vpop.eup %1742  ;;  %v1142_v47 = vmul.f32 %v1741_v33, %v964_v16  ;;  %1758 = vrcp.f32 %v1191_v0  ;;  %v1049_v7 = vpop.f32.mrb[31].mxu0 }
 0x2a6   : > { %v1073_v2 = vpop.f32.mrb[31].mxu1  ;;  %v1745_v39 = vpop.eup %1744  ;;  %1760 = vrcp.f32 %v1049_v7  ;;  %v1189_v52 = vadd.f32 1.0, %v1743_v41 }
 0x2a7   : > { %v1150_v55 = vmul.f32 %v1739_v1, %v1142_v47  ;;  %1762 = vrcp.f32 %v1073_v2  ;;  %v1747_v3 = vpop.eup %1746  ;;  %v1053_v56 = vpop.f32.mrb[32].mxu0  ;;  %v1193_v43 = vadd.f32 1.0, %v1745_v39 }
 0x2a8   : > { %1764 = vrcp.f32 %v1188_v4  ;;  %v1077_v51 = vpop.f32.mrb[32].mxu1  ;;  %v1749_v53 = vpop.eup %1748  ;;  %v1144_v61 = vmul.f32 %v1747_v3, %v970_v54 }
 0x2a9   : > { %1157 = vst [vmem:[%s2388_s25 + $0x28] sm:$0xff] %v1150_v55  ;;  %1766 = vrcp.f32 %v1192_v45  ;;  %v1055_v8 = vpop.f32.mrb[33].mxu0  ;;  %v1079_v11 = vpop.f32.mrb[33].mxu1  ;;  %v1190_v9 = vadd.f32 1.0, %v1749_v53 }
 0x2aa   : > { %v1751_v13 = vpop.eup %1750  ;;  %1768 = vrcp.f32 %v1055_v8 }
 0x2ab   : > { %v1151_v14 = vmul.f32 %v1751_v13, %v1144_v61  ;;  %1770 = vrcp.f32 %v1079_v11  ;;  %v1059_v10 = vpop.f32.mrb[34].mxu0 }
 0x2ac   : > { %v1753_v23 = vpop.eup %1752  ;;  %1772 = vrcp.f32 %v1189_v52  ;;  %v1061_v15 = vpop.f32.mrb[35].mxu0 }
 0x2ad   : > { %v1755_v48 = vpop.eup %1754  ;;  %1158 = vst [vmem:[%s2388_s25 + $0x30] sm:$0x1] %v1151_v14  ;;  %v1209_v46 = vmul.f32 %v1753_v23, %v1041_v27  ;;  %1774 = vrcp.f32 %v1193_v43 }
 0x2ae   : > { %v1757_v62 = vpop.eup %1756  ;;  %v1217_v58 = vmul.f32 %v1755_v48, %v1065_v60  ;;  %1776 = vrcp.f32 %v1061_v15 }
 0x2af   : > { %v1759_v12 = vpop.eup %1758  ;;  %v1222_v20 = vmul.f32 %v1757_v62, %v1209_v46  ;;  %1778 = vrcp.f32 %v1190_v9 }
 0x2b0   : > { %v1761_v49 = vpop.eup %1760  ;;  %v1226_v50 = vmul.f32 %v1759_v12, %v1217_v58 }
 0x2b1   : > { %v1763_v17 = vpop.eup %1762  ;;  %1393 = vst [vmem:[%s2388_s25 + $0x38] sm:$0xff] %v1222_v20  ;;  %v1211_v59 = vmul.f32 %v1761_v49, %v1047_v36 }
 0x2b2   : > { %v1765_v16 = vpop.eup %1764  ;;  %1397 = vst [vmem:[%s2388_s25 + $0x58] sm:$0xff] %v1226_v50  ;;  %v1219_v6 = vmul.f32 %v1763_v17, %v1071_v40 }
 0x2b3   : > { %v1767_v21 = vpop.eup %1766  ;;  %v1223_v5 = vmul.f32 %v1765_v16, %v1211_v59 }
 0x2b4   : > { %v1769_v22 = vpop.eup %1768  ;;  %v1227_v31 = vmul.f32 %v1767_v21, %v1219_v6 }
 0x2b5   : > { %v1771_v32 = vpop.eup %1770  ;;  %1394 = vst [vmem:[%s2388_s25 + $0x40] sm:$0xff] %v1223_v5  ;;  %v1213_v19 = vmul.f32 %v1769_v22, %v1053_v56 }
 0x2b6   : > { %v1773_v24 = vpop.eup %1772  ;;  %1398 = vst [vmem:[%s2388_s25 + $0x60] sm:$0xff] %v1227_v31  ;;  %v1221_v54 = vmul.f32 %v1771_v32, %v1077_v51 }
 0x2b7   : > { %v1775_v38 = vpop.eup %1774  ;;  %v1224_v42 = vmul.f32 %v1773_v24, %v1213_v19 }
 0x2b8   : > { %v1777_v28 = vpop.eup %1776  ;;  %v1228_v29 = vmul.f32 %v1775_v38, %v1221_v54 }
 0x2b9   : > { %1395 = vst [vmem:[%s2388_s25 + $0x48] sm:$0xff] %v1224_v42  ;;  %v1215_v34 = vmul.f32 %v1777_v28, %v1059_v10  ;;  %v1779_v57 = vpop.eup %1778 }
 0x2ba   : > { %1399 = vst [vmem:[%s2388_s25 + $0x68] sm:$0x1] %v1228_v29 }
 0x2bb   : > { %v1225_v18 = vmul.f32 %v1779_v57, %v1215_v34 }
 0x2bd   : > { %1396 = vst [vmem:[%s2388_s25 + $0x50] sm:$0xff] %v1225_v18 }
 0x2be PF: > { %s18_s20 = sadd.s32 1, %s1920_s20   ;;  %s2443_s15 = smov %s1904_s16 }
 0x2bf   : > { %p15_p9 = scmp.ge.s32.totalorder %s18_s20, 4   ;;  %s2444_s16 = smov %s1908_s17 }
 0x2c0   : > { %s2445_s17 = smov %s2078_s29  ;;  %s2446_s18 = smov %s1916_s19 }
 0x2c1   : > { %s2447_s19 = smov %s2449_s12  ;;  %17 = sbr.rel (!%p15_p9) target bundleno = 5 (0x5), region = 86 }
 0x2c8   :  { %1270 = vsyncpa [#allocation5], 1 }
 0x2c9   :  { %1272 = vsyncpa [#allocation5 + $0x1], 1 }
 0x2ca   :  { %1273 = vsyncpa [#allocation7], 1 }

</bundles_post_ra>
